<compile_context>
chip_gen: v5e
topology: v5e:2x2
jax: 0.10.0
libtpu: 0.0.40
codegen_flags: <defaults>
</compile_context>

<pallas_src>
import functools

import jax
import jax.numpy as jnp
from jax.experimental import pallas as pl
from jax.experimental.pallas import tpu as pltpu

SUBLANE = 8


def _round_up(a: int, m: int) -> int:
    return (a + m - 1) // m * m


def _cdiv(a: int, b: int) -> int:
    return (a + b - 1) // b


def mlp_kernel(x_ref, p_ref, o_ref, *, D, H1, H2, out_dim, offs):
    r_w1, r_b1, r_w2, r_b2, r_w3, r_b3 = offs

    x = x_ref[...]

    # Layer 1: Linear + ReLU (f32 MXU accumulation)
    w1 = p_ref[r_w1:r_w1 + D, :H1]
    b1 = p_ref[r_b1:r_b1 + 1, :H1]
    h1 = jnp.dot(x, w1, preferred_element_type=jnp.float32)
    h1 = jnp.maximum(h1 + b1, 0.0)

    # Layer 2: Linear + ReLU
    w2 = p_ref[r_w2:r_w2 + H1, :H2]
    b2 = p_ref[r_b2:r_b2 + 1, :H2]
    h2 = jnp.dot(h1, w2, preferred_element_type=jnp.float32)
    h2 = jnp.maximum(h2 + b2, 0.0)

    # Layer 3: Linear (no activation).
    b3 = p_ref[r_b3:r_b3 + 1, :out_dim]
    if out_dim == 1:
        # (TB,H2) * (1,H2) broadcast + lane reduce: avoids an N=1 MXU matmul.
        w3_row = p_ref[r_w3:r_w3 + 1, :H2]           # w3^T packed as one row
        out = jnp.sum(h2 * w3_row, axis=-1, keepdims=True)
    else:
        w3 = p_ref[r_w3:r_w3 + H2, :out_dim]
        out = jnp.dot(h2, w3, preferred_element_type=jnp.float32)

    o_ref[...] = (out + b3).astype(o_ref.dtype)


def _pack_params(w1, b1, w2, b2, w3, b3):
    """Pack all weights/biases into one f32 (R, C) buffer with 8-aligned rows."""
    D, H1 = w1.shape
    H2 = w2.shape[1]
    out_dim = w3.shape[1]
    C = max(H1, H2, out_dim)

    def nxt(r, rows):
        return _round_up(r + rows, SUBLANE)

    r_w1 = 0
    r_b1 = nxt(r_w1, D)
    r_w2 = nxt(r_b1, 1)
    r_b2 = nxt(r_w2, H1)
    r_w3 = nxt(r_b2, 1)
    w3_rows = 1 if out_dim == 1 else H2
    r_b3 = nxt(r_w3, w3_rows)
    R = nxt(r_b3, 1)

    p = jnp.zeros((R, C), jnp.float32)
    p = p.at[r_w1:r_w1 + D, :H1].set(w1.astype(jnp.float32))
    p = p.at[r_b1, :H1].set(b1.reshape(-1).astype(jnp.float32))
    p = p.at[r_w2:r_w2 + H1, :H2].set(w2.astype(jnp.float32))
    p = p.at[r_b2, :H2].set(b2.reshape(-1).astype(jnp.float32))
    if out_dim == 1:
        p = p.at[r_w3, :H2].set(w3.reshape(-1).astype(jnp.float32))
    else:
        p = p.at[r_w3:r_w3 + H2, :out_dim].set(w3.astype(jnp.float32))
    p = p.at[r_b3, :out_dim].set(b3.reshape(-1).astype(jnp.float32))

    return p, (r_w1, r_b1, r_w2, r_b2, r_w3, r_b3)


def _batch_tile(B: int, block_b: int) -> int:
    """Pick a batch tile; even tile count for v7x megacore balance."""
    n = max(1, _cdiv(B, block_b))
    if n == 1:
        return B                      # block == full array dim -> always legal
    if n % 2:
        n += 1                        # even grid length splits evenly over 2 TCs
    return _round_up(_cdiv(B, n), SUBLANE)


def neural_net_forward(x, w1, b1, w2, b2, w3, b3, *, block_b: int = 2048):
    """x: (B, input_size); w_i: (in_i, out_i); b_i: (1, out_i). Returns (B, out)."""
    B, D = x.shape
    H1 = w1.shape[1]
    H2 = w2.shape[1]
    out_dim = w3.shape[1]

    x = x.astype(jnp.float32)
    params, offs = _pack_params(w1, b1, w2, b2, w3, b3)

    TB = _batch_tile(B, block_b)
    grid = (_cdiv(B, TB),)

    kernel = functools.partial(
        mlp_kernel, D=D, H1=H1, H2=H2, out_dim=out_dim, offs=offs)

    flops = 2 * B * (D * H1 + H1 * H2 + H2 * out_dim)
    bytes_accessed = 4 * (B * D + B * out_dim + params.size)

    return pl.pallas_call(
        kernel,
        out_shape=jax.ShapeDtypeStruct((B, out_dim), jnp.float32),
        grid_spec=pl.GridSpec(
            grid=grid,
            in_specs=[
                # x streamed in (TB, D) tiles; D equals full last dim -> legal.
                pl.BlockSpec((TB, D), lambda i: (i, 0)),
                # Packed params: same block every step -> VMEM-resident.
                pl.BlockSpec(params.shape, lambda i: (0, 0)),
            ],
            out_specs=pl.BlockSpec((TB, out_dim), lambda i: (i, 0)),
        ),
        compiler_params=pltpu.CompilerParams(
            dimension_semantics=("parallel",),      # megacore split on v7x
            vmem_limit_bytes=32 * 1024 * 1024,
        ),
        cost_estimate=pl.CostEstimate(
            flops=flops, transcendentals=0, bytes_accessed=bytes_accessed),
    )(x, params)


def init_params(key, input_size, hidden1, hidden2, output_size):
    """Deterministic init mimicking nn.Linear's uniform(-1/sqrt(fan_in), ...)."""
    keys = jax.random.split(key, 6)

    def linear_params(kw, kb, fan_in, fan_out):
        bound = 1.0 / jnp.sqrt(jnp.float32(fan_in))
        # PyTorch weight is (out, in); store transposed as (in, out) for x @ W.
        w = jax.random.uniform(kw, (fan_in, fan_out), jnp.float32, -bound, bound)
        b = jax.random.uniform(kb, (1, fan_out), jnp.float32, -bound, bound)
        return w, b

    w1, b1 = linear_params(keys[0], keys[1], input_size, hidden1)
    w2, b2 = linear_params(keys[2], keys[3], hidden1, hidden2)
    w3, b3 = linear_params(keys[4], keys[5], hidden2, output_size)
    return w1, b1, w2, b2, w3, b3


def _reference(x, w1, b1, w2, b2, w3, b3):
    h = jnp.maximum(x @ w1 + b1, 0.0)
    h = jnp.maximum(h @ w2 + b2, 0.0)
    return h @ w3 + b3


if __name__ == "__main__":
    # Boston-housing-like shapes: 13 features -> 32 -> 16 -> 1.
    batch, input_size, hidden1, hidden2, output_size = 8, 13, 32, 16, 1

    key = jax.random.PRNGKey(0)
    kx, kp = jax.random.split(key)
    x = jax.random.normal(kx, (batch, input_size), dtype=jnp.float32)
    params = init_params(kp, input_size, hidden1, hidden2, output_size)

    # Small batch (single tile, TB == B).
    out = jax.block_until_ready(neural_net_forward(x, *params))
    ref = _reference(x, *params)
    assert out.shape == (batch, output_size)
    assert jnp.allclose(out, ref, atol=1e-5, rtol=1e-5)

    # Larger, non-divisible batch: single ragged-free tile (TB == B == 1037).
    xb = jax.random.normal(jax.random.PRNGKey(1), (1037, input_size), jnp.float32)
    refb = _reference(xb, *params)
    outb = jax.block_until_ready(neural_net_forward(xb, *params))
    assert outb.shape == (1037, output_size)
    assert jnp.allclose(outb, refb, atol=1e-4, rtol=1e-4)

    # Force the multi-tile path: even grid length (v7x balance) + masked ragged
    # last tile.
    outc = jax.block_until_ready(neural_net_forward(xb, *params, block_b=256))
    assert jnp.allclose(outc, refb, atol=1e-4, rtol=1e-4)

    print("KERNEL_OK")
</pallas_src>

<mosaic_0001>
module attributes {stable_mosaic.version = 11 : i64} {
  func.func @mlp_kernel(%arg0: i32, %arg1: memref<8x13xf32, #tpu.memory_space<vmem>>, %arg2: memref<80x32xf32, #tpu.memory_space<vmem>>, %arg3: memref<8x1xf32, #tpu.memory_space<vmem>>) attributes {dimension_semantics = [#tpu.dimension_semantics<parallel>], iteration_bounds = array<i64: 1>, scalar_prefetch = 0 : i64, scratch_operands = 0 : i64, tpu.core_type = #tpu.core_type<tc>, window_params = [{transform_indices = @transform_0, window_bounds = array<i64: 8, 13>}, {pipeline_mode = #tpu.pipeline_mode<synchronous>, transform_indices = @transform_1, window_bounds = array<i64: 80, 32>}, {transform_indices = @transform_2, window_bounds = array<i64: 8, 1>}]} {
    %c0 = arith.constant 0 : index
    %c0_0 = arith.constant 0 : index
    %0 = vector.load %arg1[%c0, %c0_0] : memref<8x13xf32, #tpu.memory_space<vmem>>, vector<8x13xf32>
    %c0_1 = arith.constant 0 : index
    %c0_2 = arith.constant 0 : index
    %1 = vector.load %arg2[%c0_1, %c0_2] : memref<80x32xf32, #tpu.memory_space<vmem>>, vector<13x32xf32>
    %c16 = arith.constant 16 : index
    %c0_3 = arith.constant 0 : index
    %2 = vector.load %arg2[%c16, %c0_3] : memref<80x32xf32, #tpu.memory_space<vmem>>, vector<1x32xf32>
    %cst = arith.constant dense<0.000000e+00> : vector<8x32xf32>
    %3 = tpu.matmul %0, %1, %cst {dimension_numbers = #tpu.dot_dimension_numbers<[1], [0], [0], [1], [0, 0, 1, 1], [], []>} : vector<8x13xf32>, vector<13x32xf32>, vector<8x32xf32> -> vector<8x32xf32>
    %4 = vector.broadcast %2 : vector<1x32xf32> to vector<8x32xf32>
    %5 = arith.addf %3, %4 : vector<8x32xf32>
    %cst_4 = arith.constant 0.000000e+00 : f32
    %6 = vector.broadcast %cst_4 : f32 to vector<8x32xf32>
    %7 = arith.maximumf %5, %6 : vector<8x32xf32>
    %c24 = arith.constant 24 : index
    %c0_5 = arith.constant 0 : index
    %8 = vector.load %arg2[%c24, %c0_5] : memref<80x32xf32, #tpu.memory_space<vmem>>, vector<32x16xf32>
    %c56 = arith.constant 56 : index
    %c0_6 = arith.constant 0 : index
    %9 = vector.load %arg2[%c56, %c0_6] : memref<80x32xf32, #tpu.memory_space<vmem>>, vector<1x16xf32>
    %cst_7 = arith.constant dense<0.000000e+00> : vector<8x16xf32>
    %10 = tpu.matmul %7, %8, %cst_7 {dimension_numbers = #tpu.dot_dimension_numbers<[1], [0], [0], [1], [0, 0, 1, 1], [], []>} : vector<8x32xf32>, vector<32x16xf32>, vector<8x16xf32> -> vector<8x16xf32>
    %11 = vector.broadcast %9 : vector<1x16xf32> to vector<8x16xf32>
    %12 = arith.addf %10, %11 : vector<8x16xf32>
    %cst_8 = arith.constant 0.000000e+00 : f32
    %13 = vector.broadcast %cst_8 : f32 to vector<8x16xf32>
    %14 = arith.maximumf %12, %13 : vector<8x16xf32>
    %c72 = arith.constant 72 : index
    %c0_9 = arith.constant 0 : index
    %15 = vector.load %arg2[%c72, %c0_9] : memref<80x32xf32, #tpu.memory_space<vmem>>, vector<1x1xf32>
    %c64 = arith.constant 64 : index
    %c0_10 = arith.constant 0 : index
    %16 = vector.load %arg2[%c64, %c0_10] : memref<80x32xf32, #tpu.memory_space<vmem>>, vector<1x16xf32>
    %17 = vector.broadcast %16 : vector<1x16xf32> to vector<8x16xf32>
    %18 = arith.mulf %14, %17 : vector<8x16xf32>
    %cst_11 = arith.constant dense<0.000000e+00> : vector<8xf32>
    %19 = vector.multi_reduction <add>, %18, %cst_11 [1] : vector<8x16xf32> to vector<8xf32>
    %20 = vector.shape_cast %19 : vector<8xf32> to vector<8x1xf32>
    %21 = vector.broadcast %15 : vector<1x1xf32> to vector<8x1xf32>
    %22 = arith.addf %20, %21 : vector<8x1xf32>
    %c0_12 = arith.constant 0 : index
    %c0_13 = arith.constant 0 : index
    %23 = vector.load %arg3[%c0_12, %c0_13] : memref<8x1xf32, #tpu.memory_space<vmem>>, vector<8x1xf32>
    tpu.vector_store %arg3[%c0_12, %c0_13], %22 {strides = array<i32>} : memref<8x1xf32, #tpu.memory_space<vmem>>, vector<8x1xf32>,
    return
  }
  func.func @transform_0(%arg0: i32) -> (i32, i32) {
    %c0_i32 = arith.constant 0 : i32
    %c0_i32_0 = arith.constant 0 : i32
    return %arg0, %c0_i32 : i32, i32
  }
  func.func @transform_1(%arg0: i32) -> (i32, i32) {
    %c0_i32 = arith.constant 0 : i32
    %c0_i32_0 = arith.constant 0 : i32
    %c0_i32_1 = arith.constant 0 : i32
    return %c0_i32, %c0_i32_0 : i32, i32
  }
  func.func @transform_2(%arg0: i32) -> (i32, i32) {
    %c0_i32 = arith.constant 0 : i32
    %c0_i32_0 = arith.constant 0 : i32
    return %arg0, %c0_i32 : i32, i32
  }
}

</mosaic_0001>

<bundles_post_ra>
// kernel: tpu_custom_call.1
= control target key start
LH: loop header
LB: loop body
LE: loop exit
PB: predicated region body
PF: predicated region fallthrough
CT: control target
= control target key end

     0   :  { %vm20_vm0 = vcmask 1044480   ;;  %vm16_vm1 = vcmask 105472   ;;  %vm51_vm2 = vcmask 261120   ;;  %vm80_vm3 = vcmask 130048   ;;  %s150_s1 = inlined_call_operand.vmem [shape: f32[80,32], index: 1, kind: input, shape index: {}]   ;;  %s151_s0 = inlined_call_operand.vmem [shape: f32[8,13], index: 0, kind: input, shape index: {}]   ;;  %s152_s2 = inlined_call_operand.vmem [shape: f32[8,1], index: 2, kind: output, shape index: {}]  }
   0x1   :  { %v13_v0 = vld [vmem:[%s150_s1 + $0x8] sm:$0x1f]  ;;  %v12_v1 = vld [vmem:[%s150_s1] sm:$0xff]  ;;  %v48_v3 = vld [vmem:[%s150_s1 + $0x30] sm:$0xff]  ;;  %vm86_vm4 = vcmask 7168  }
   0x2   :  { %92 = vmatpush.msk.msra.mxu0 %vm20_vm0, %v13_v0  ;;  %v11_v2 = vld [vmem:[%s151_s0] sm:$0xff]  ;;  %67 = vmatpush.msra.mxu1 %v48_v3  ;;  %v47_v4 = vld [vmem:[%s150_s1 + $0x28] sm:$0xff]  ;;  %v45_v6 = vld [vmem:[%s150_s1 + $0x18] sm:$0xff] }
   0x3   :  { %v46_v5 = vld [vmem:[%s150_s1 + $0x20] sm:$0xff]  ;;  %v95_v7 = vld [vmem:[%s150_s1 + $0x10] ss:$0 sm:$0xff]  ;;  %v96_v11 = vld [vmem:[%s150_s1 + $0x38] ss:$0 sm:$0xff] }
   0x4   :  { %39 = vmatpush.msra.mxu0 %v12_v1  ;;  %68 = vmatpush.msra.mxu1 %v47_v4  ;;  %v97_v14 = vld [vmem:[%s150_s1 + $0x40] ss:$0 sm:$0xff]  ;;  %v98_v18 = vld [vmem:[%s150_s1 + $0x48] ss:$0 sm:$0xff] }
   0x5   :  { %93 = vmatmul.msk.f32.vlgmr.msra.gmra.mxu0 %vm16_vm1, %v11_v2 }
   0x6   :  { %69 = vmatpush.msra.mxu1 %v46_v5 }
   0x8   :  { %70 = vmatpush.msra.mxu1 %v45_v6 }
  0x82   :  { %v41_v8 = vpop.f32.mrf.mxu0 }
  0x83   :  { %v42_v9 = vadd.f32 %v95_v7, %v41_v8 }
  0x85   :  { %v44_v10 = vmax.f32 %v42_v9, 0.0 }
  0x87   :  { %94 = vmatmul.msk.f32.vlgmr.msra.gmra.mxu1 %vm51_vm2, %v44_v10 }
 0x104   :  { %v72_v12 = vpop.f32.mrf.mxu1 }
 0x105   :  { %v73_v13 = vadd.f32 %v96_v11, %v72_v12 }
 0x107   :  { %v75_v15 = vmax.f32 %v73_v13, 0.0 }
 0x109   :  { %v79_v16 = vmul.f32 %v97_v14, %v75_v15 }
 0x10b   :  { %v81_v17 = vsel %vm80_vm3, %v79_v16, 0.0 }
 0x10c   :  { %82 = vadd.xlane.f32.xlu0 %v81_v17 }
 0x17f   :  { %v83_v19 = vpop.xlane.xlu0 %82 }
 0x180   :  { %v85_v20 = vadd.f32 %v98_v18, %v83_v19 }
 0x182   :  { %87 = vst.msk [vmem:[%s152_s2] sm:$0xff] %vm86_vm4, %v85_v20 }

</bundles_post_ra>
